<compile_context>
chip_gen: v7x
topology: tpu7x:2x2x1
jax: 0.10.0
libtpu: 0.0.40
codegen_flags: <defaults>
</compile_context>

<pallas_src>
import functools
import math

import jax
import jax.numpy as jnp
from jax.experimental import pallas as pl
from jax.experimental.pallas import tpu as pltpu

_EPS = 1e-12                      # torch F.normalize default eps
_PER_TILE_BUDGET_BYTES = 6 << 20  # per live tile; 4 live tiles ~= 24 MiB
_VMEM_LIMIT_BYTES = 32 << 20      # <= physical on v5e/v6e/v7x; raises v5e's 16 MiB default
_FALLBACK_TILE_BYTES = 12 << 20   # if a single minimal tile exceeds this -> plain JAX


def _round_up(n, m):
    return ((n + m - 1) // m) * m


def _native_sublane(dtype):
    # dtype-native sublane tile: 8 for 4-byte, 16 for 2-byte, 32 for 1-byte.
    return {4: 8, 2: 16, 1: 32}.get(jnp.dtype(dtype).itemsize, 8)


def _rsqrt_scale(sumsq):
    # 1 / max(sqrt(sumsq), eps) == rsqrt(max(sumsq, eps^2)): one EUP op.
    return jax.lax.rsqrt(jnp.maximum(sumsq, jnp.float32(_EPS * _EPS)))


# ---------------------------------------------------------------------------
# 2-D case: normalize along the last (lane) axis.
# ---------------------------------------------------------------------------
def _rowwise_kernel(x_ref, o_ref, *, valid_d):
    xf = x_ref[...].astype(jnp.float32)                # (row_block, d)
    sq = xf * xf
    if valid_d is not None:
        # Defensive tail-lane mask when d is not a multiple of 128; cheap VALU
        # work hidden under DMA in this memory-bound kernel.
        lane = jax.lax.broadcasted_iota(jnp.int32, sq.shape, dimension=1)
        sq = jnp.where(lane < valid_d, sq, 0.0)
    sumsq = jnp.sum(sq, axis=-1, keepdims=True)        # f32 accumulation
    o_ref[...] = (xf * _rsqrt_scale(sumsq)).astype(o_ref.dtype)


def _l2_normalize_lastaxis(x):
    b, d = x.shape
    itemsize = jnp.dtype(x.dtype).itemsize
    sub = _native_sublane(x.dtype)
    row_bytes = d * itemsize

    # Pathologically wide rows: even one minimal stripe blows VMEM.
    # TODO(synk): two-pass feature-split Pallas kernel for very wide d.
    if 4 * sub * row_bytes > _FALLBACK_TILE_BYTES:
        xf = x.astype(jnp.float32)
        sumsq = jnp.sum(xf * xf, axis=-1, keepdims=True)
        return (xf * _rsqrt_scale(sumsq)).astype(x.dtype)

    if b <= sub:
        row_block = b                                   # full-dim block (legal)
    else:
        budget_rows = max(
            sub, ((_PER_TILE_BUDGET_BYTES // row_bytes) // sub) * sub
        )
        row_block = min(budget_rows, _round_up(b, sub))
        # Guarantee >= 2 grid steps so v7x's two TensorCores both get work and
        # the DMA pipeline overlaps compute even when the batch fits one tile.
        if row_block >= b:
            row_block = max(sub, _round_up(pl.cdiv(b, 2), sub))

    grid = (pl.cdiv(b, row_block),)
    kernel = functools.partial(
        _rowwise_kernel, valid_d=(d if d % 128 else None)
    )
    return pl.pallas_call(
        kernel,
        out_shape=jax.ShapeDtypeStruct((b, d), x.dtype),
        grid_spec=pltpu.PrefetchScalarGridSpec(
            num_scalar_prefetch=0,
            grid=grid,
            in_specs=[pl.BlockSpec((row_block, d), lambda i: (i, 0))],
            out_specs=pl.BlockSpec((row_block, d), lambda i: (i, 0)),
        ),
        compiler_params=pltpu.CompilerParams(
            dimension_semantics=("parallel",),
            vmem_limit_bytes=_VMEM_LIMIT_BYTES,
        ),
    )(x)


# ---------------------------------------------------------------------------
# N-D case (ndim > 2): normalize along dim=1 (channels) with no HBM transposes.
# x is reshaped (free) to (N, C, S); blocks are (1, C, s_tile) so the channel
# reduction is cheap sublane/cross-vreg work and spatial stays on the lanes.
# ---------------------------------------------------------------------------
def _channel_kernel(x_ref, o_ref):
    xf = x_ref[...].astype(jnp.float32)                # (1, C, s_tile)
    sumsq = jnp.sum(xf * xf, axis=1, keepdims=True)    # reduce over channels
    o_ref[...] = (xf * _rsqrt_scale(sumsq)).astype(o_ref.dtype)


def _l2_normalize_dim1_nd(x):
    n, c = x.shape[0], x.shape[1]
    s = math.prod(x.shape[2:])
    itemsize = jnp.dtype(x.dtype).itemsize
    col_bytes = c * itemsize
    min_s_tile = s if s <= 128 else 128

    # Pathologically large channel count: even a 128-lane stripe blows VMEM.
    # TODO(synk): channel-split two-pass Pallas kernel for very large C.
    if 4 * col_bytes * max(min_s_tile, 1) > _FALLBACK_TILE_BYTES:
        xf = x.astype(jnp.float32)
        sumsq = jnp.sum(xf * xf, axis=1, keepdims=True)
        return (xf * _rsqrt_scale(sumsq)).astype(x.dtype)

    x3 = x.reshape(n, c, s)                            # no data movement

    if s <= 128:
        s_tile = s                                      # full-dim block (legal)
    else:
        budget_cols = max(
            128, ((_PER_TILE_BUDGET_BYTES // col_bytes) // 128) * 128
        )
        s_tile = min(budget_cols, (s // 128) * 128)     # never exceeds s
        if n == 1:
            # Guarantee >= 2 total grid steps (v7x megacore / DMA overlap).
            s_tile = min(s_tile, max(128, _round_up(pl.cdiv(s, 2), 128)))

    grid = (n, pl.cdiv(s, s_tile))
    out3 = pl.pallas_call(
        _channel_kernel,
        out_shape=jax.ShapeDtypeStruct((n, c, s), x.dtype),
        grid_spec=pltpu.PrefetchScalarGridSpec(
            num_scalar_prefetch=0,
            grid=grid,
            in_specs=[pl.BlockSpec((1, c, s_tile), lambda i, j: (i, 0, j))],
            out_specs=pl.BlockSpec((1, c, s_tile), lambda i, j: (i, 0, j)),
        ),
        compiler_params=pltpu.CompilerParams(
            dimension_semantics=("parallel", "parallel"),
            vmem_limit_bytes=_VMEM_LIMIT_BYTES,
        ),
    )(x3)
    return out3.reshape(x.shape)                        # no data movement


def l2_normalize(x):
    """F.normalize(x, p=2, dim=1): L2-normalize along axis 1 of an N-D array."""
    if x.ndim < 2:
        raise ValueError("need at least 2 dims to normalize along dim=1")
    if x.ndim == 2:
        return _l2_normalize_lastaxis(x)
    return _l2_normalize_dim1_nd(x)


def _ref_normalize(x, axis=1):
    xf = x.astype(jnp.float32)
    norm = jnp.sqrt(jnp.sum(xf * xf, axis=axis, keepdims=True))
    return (xf / jnp.maximum(norm, _EPS)).astype(x.dtype)


if __name__ == "__main__":
    key = jax.random.PRNGKey(0)
    k0, k1, k2, k3, k4 = jax.random.split(key, 5)

    # CLIP-like 2D embedding batch: batch=8, hidden=32; normalize along dim=1.
    x = jax.random.normal(k0, (8, 32), dtype=jnp.float32)
    out = jax.block_until_ready(l2_normalize(x))
    ref = _ref_normalize(x, axis=1)
    assert jnp.allclose(out, ref, atol=1e-5, rtol=1e-5), "2D mismatch vs reference"
    assert jnp.allclose(
        jnp.linalg.norm(out, axis=1), jnp.ones(out.shape[0]), atol=1e-5
    ), "rows are not unit-norm"

    # Awkward sizes: exercises the ragged batch grid (10 rows, 8-row blocks)
    # and the un-padded feature axis (d=200) with the tail-lane mask.
    x_odd = jax.random.normal(k1, (10, 200), dtype=jnp.float32)
    out_odd = jax.block_until_ready(l2_normalize(x_odd))
    ref_odd = _ref_normalize(x_odd, axis=1)
    assert jnp.allclose(out_odd, ref_odd, atol=1e-5, rtol=1e-5), "ragged 2D mismatch"

    # 4D input, normalization over dim=1 (channel axis), like the nn.Module.
    x4 = jax.random.normal(k2, (2, 4, 16, 16), dtype=jnp.float32)
    out4 = jax.block_until_ready(l2_normalize(x4))
    ref4 = _ref_normalize(x4, axis=1)
    assert jnp.allclose(out4, ref4, atol=1e-5, rtol=1e-5), "4D mismatch"

    # bf16 2D path (16-row sublane tiles, aligned d, >=2 grid steps).
    xb = jax.random.normal(k3, (33, 512), dtype=jnp.bfloat16)
    outb = jax.block_until_ready(l2_normalize(xb))
    refb = _ref_normalize(xb, axis=1)
    assert jnp.allclose(
        outb.astype(jnp.float32), refb.astype(jnp.float32), atol=2e-2, rtol=2e-2
    ), "bf16 2D mismatch"

    # bf16 4D path with a ragged spatial grid (S = 10*13 = 130, s_tile = 128).
    xb4 = jax.random.normal(k4, (2, 5, 10, 13), dtype=jnp.bfloat16)
    outb4 = jax.block_until_ready(l2_normalize(xb4))
    refb4 = _ref_normalize(xb4, axis=1)
    assert jnp.allclose(
        outb4.astype(jnp.float32), refb4.astype(jnp.float32), atol=2e-2, rtol=2e-2
    ), "bf16 4D mismatch"

    print("KERNEL_OK")
</pallas_src>

<mosaic_0001>
module attributes {stable_mosaic.version = 11 : i64} {
  func.func @_rowwise_kernel(%arg0: i32, %arg1: memref<8x32xf32, #tpu.memory_space<vmem>>, %arg2: memref<8x32xf32, #tpu.memory_space<vmem>>) attributes {dimension_semantics = [#tpu.dimension_semantics<parallel>], iteration_bounds = array<i64: 1>, scalar_prefetch = 0 : i64, scratch_operands = 0 : i64, tpu.core_type = #tpu.core_type<tc>, window_params = [{transform_indices = @transform_0, window_bounds = array<i64: 8, 32>}, {transform_indices = @transform_1, window_bounds = array<i64: 8, 32>}]} {
    %c0 = arith.constant 0 : index
    %c0_0 = arith.constant 0 : index
    %0 = vector.load %arg1[%c0, %c0_0] : memref<8x32xf32, #tpu.memory_space<vmem>>, vector<8x32xf32>
    %1 = arith.mulf %0, %0 : vector<8x32xf32>
    %2 = tpu.iota {dimensions = array<i32: 1>} : vector<8x32xi32>
    %c32_i32 = arith.constant 32 : i32
    %3 = vector.broadcast %c32_i32 : i32 to vector<8x32xi32>
    %4 = arith.cmpi slt, %2, %3 : vector<8x32xi32>
    %cst = arith.constant 0.000000e+00 : f32
    %5 = vector.broadcast %cst : f32 to vector<8x32xf32>
    %6 = arith.select %4, %1, %5 : vector<8x32xi1>, vector<8x32xf32>
    %cst_1 = arith.constant dense<0.000000e+00> : vector<8xf32>
    %7 = vector.multi_reduction <add>, %6, %cst_1 [1] : vector<8x32xf32> to vector<8xf32>
    %8 = vector.shape_cast %7 : vector<8xf32> to vector<8x1xf32>
    %cst_2 = arith.constant 1.000000e-24 : f32
    %9 = vector.broadcast %cst_2 : f32 to vector<8x1xf32>
    %10 = arith.maximumf %8, %9 : vector<8x1xf32>
    %11 = math.rsqrt %10 : vector<8x1xf32>
    %12 = vector.broadcast %11 : vector<8x1xf32> to vector<8x32xf32>
    %13 = arith.mulf %0, %12 : vector<8x32xf32>
    %c0_3 = arith.constant 0 : index
    %c0_4 = arith.constant 0 : index
    %14 = vector.load %arg2[%c0_3, %c0_4] : memref<8x32xf32, #tpu.memory_space<vmem>>, vector<8x32xf32>
    tpu.vector_store %arg2[%c0_3, %c0_4], %13 {strides = array<i32>} : memref<8x32xf32, #tpu.memory_space<vmem>>, vector<8x32xf32>,
    return
  }
  func.func @transform_0(%arg0: i32) -> (i32, i32) {
    %c0_i32 = arith.constant 0 : i32
    %c0_i32_0 = arith.constant 0 : i32
    return %arg0, %c0_i32 : i32, i32
  }
  func.func @transform_1(%arg0: i32) -> (i32, i32) {
    %c0_i32 = arith.constant 0 : i32
    %c0_i32_0 = arith.constant 0 : i32
    return %arg0, %c0_i32 : i32, i32
  }
}

</mosaic_0001>

<bundles_post_ra>
// kernel: tpu_custom_call.1
= control target key start
LH: loop header
LB: loop body
LE: loop exit
PB: predicated region body
PF: predicated region fallthrough
CT: control target
= control target key end

     0   :  { %6 = vsyncpa [#allocation3], 0  ;;  %s138_s0 = inlined_call_operand.hbm [shape: f32[8,32], index: 0, kind: input, shape index: {}]   ;;  %s139_s1 = inlined_call_operand.hbm [shape: f32[8,32], index: 1, kind: output, shape index: {}]  }
   0x1   :  { %7 = vsyncpa [#allocation4], 0  ;;  %s102_s6 = smov [#allocation2]   ;;  %s54_s10 = scalar_lea.hbm %s138_s0, 128 }
   0x2   :  { %s14_s7 = sshll.u32 %s102_s6, 4  ;;  %p55_p0 = scmp.ne.s32.totalorder %s138_s0, %s54_s10  ;;  %s15_s7 = int_to_ptr.vmem [resolvable:$true] %s14_s7 }
   0x3   :  { %p58_p1 = scmp.lt.u32.totalorder %s54_s10, %s138_s0 }
   0x5   :  { %p60_p2 = pnand %p58_p1, %p55_p0 }
   0x7   :  { %63 = shalt.err (!%p60_p2)
}
   0x8   :  { %s64_s15 = scalar_lea.vmem %s15_s7, 128  ;;  %p69_p4 = scmp.lt.s32.totalorder %s15_s7, %s15_s7 }
   0x9   :  { %p65_p3 = scmp.ne.s32.totalorder %s15_s7, %s64_s15  ;;  %p70_p5 = scmp.lt.s32.totalorder %s64_s15, %s64_s15 }
   0xb   :  { %p71_p6 = por %p70_p5, %p69_p4 }
   0xd   :  { %p72_p7 = pnand %p71_p6, %p65_p3 }
   0xf   :  { %75 = shalt.err (!%p72_p7)
}
  0x10   :  { %17 = dma.hbm_to_vmem [thread:$0]  %s138_s0, 128, %s15_s7, [#allocation3]  }
  0x11   :  { %98 = dma.done.wait [#allocation3], 128  }
  0x12   :  { %99 = vsyncadd [#allocation3], 4294967168  ;;  %v23_v0 = vlaneseq  ;;  %v21_v2 = vld [vmem:[#allocation2] sm:$0xff]  ;;  %vm27_vm1 = vcmask 261120   ;;  %s103_s18 = smov [#allocation5]  }
  0x13   :  { %v22_v3 = vmul.f32 %v21_v2, %v21_v2  ;;  %s41_s19 = sshll.u32 %s103_s18, 4  ;;  %s42_s19 = int_to_ptr.vmem [resolvable:$true] %s41_s19 }
  0x14   :  { %v24_v1 = vand.u32 127, %v23_v0  ;;  %s76_s0 = scalar_lea.vmem %s42_s19, 128  ;;  %p81_p9 = scmp.lt.s32.totalorder %s42_s19, %s42_s19 }
  0x15   :  { %p77_p8 = scmp.ne.s32.totalorder %s42_s19, %s76_s0  ;;  %p82_p10 = scmp.lt.s32.totalorder %s76_s0, %s76_s0 }
  0x16   :  { %vm25_vm0 = vcmp.lt.s32.totalorder %v24_v1, 32 }
  0x17   :  { %v26_v4 = vsel %vm25_vm0, %v22_v3, 0.0  ;;  %p83_p11 = por %p82_p10, %p81_p9 }
  0x18   :  { %v28_v5 = vsel %vm27_vm1, %v26_v4, 0.0 }
  0x19   :  { %29 = vadd.xlane.f32.xlu0 %v28_v5  ;;  %p84_p12 = pnand %p83_p11, %p77_p8 }
  0xa6   :  { %v30_v6 = vpop.xlane.xlu0 %29 }
  0xa7   :  { %v31_v7 = vmax.f32 %v30_v6, 1e-24 }
  0xa9   :  { %52 = vrsqrt.f32 %v31_v7 }
  0xb3   :  { %v53_v8 = vpop.eup %52 }
  0xb4   :  { %v33_v9 = vmul.f32 %v53_v8, %v21_v2 }
  0xb6   :  { %34 = vst.msk [vmem:[#allocation5] sm:$0xff] %vm27_vm1, %v33_v9 }
  0xb7   :  { %87 = shalt.err (!%p84_p12)
}
  0xb8   :  { %s88_s22 = scalar_lea.hbm %s139_s1, 128 }
  0xb9   :  { %p89_p13 = scmp.ne.s32.totalorder %s139_s1, %s88_s22  ;;  %p92_p0 = scmp.lt.u32.totalorder %s88_s22, %s139_s1 }
  0xbb   :  { %p94_p1 = pnand %p92_p0, %p89_p13 }
  0xbd   :  { %97 = shalt.err (!%p94_p1)
}
  0xbe   :  { %44 = dma.vmem_to_hbm [thread:$0]  %s42_s19, 128, %s139_s1, [#allocation4]  }
  0xbf   :  { %100 = dma.done.wait [#allocation4], 128  }
  0xc0   :  { %101 = vsyncadd [#allocation4], 4294967168 }
  0xc1   :  { %48 = vsyncpa [#allocation3], 1 }
  0xc2   :  { %49 = vsyncpa [#allocation4], 1 }

</bundles_post_ra>
